<compile_context>
chip_gen: v7x
topology: tpu7x:2x2x1
jax: 0.10.0
libtpu: 0.0.40
codegen_flags: <defaults>
</compile_context>

<pallas_src>
import math

import jax
import jax.numpy as jnp
from jax.experimental import pallas as pl
from jax.experimental.pallas import tpu as pltpu


def _round_up(x, m):
    return (x + m - 1) // m * m


def _chip_profile():
    """Generation-aware knobs.  v5e/v6e: 128 MiB VMEM, 1 TensorCore -> big row
    tiles, high vmem cap, no forced grid split.  v7x: 64 MiB VMEM, 2 TCs ->
    conservative caps and a >=2-step split so 'parallel' shards across cores."""
    kind = ""
    try:
        kind = jax.devices()[0].device_kind.lower()
    except Exception:
        pass
    if "v7" in kind or "7x" in kind:
        prof = {"max_tm": 512, "vmem_cap": 48 << 20, "num_tc": 2}
    elif "v5" in kind or "v6" in kind or "lite" in kind:
        prof = {"max_tm": 2048, "vmem_cap": 100 << 20, "num_tc": 1}
    else:  # unknown part: stay conservative, assume single visible TC
        prof = {"max_tm": 512, "vmem_cap": 48 << 20, "num_tc": 1}
    try:  # refine the cap from the hardware query when available
        phys = int(pltpu.get_tpu_info().vmem_capacity_bytes)
        prof["vmem_cap"] = max(32 << 20, min(prof["vmem_cap"], (phys * 3) // 4))
    except Exception:
        pass
    return prof


def _vmem_buf_bytes(rows, cols, itemsize):
    """Bytes one VMEM buffer of (rows, cols) occupies ((sublane,128)-tiled)."""
    sub = 8 if itemsize >= 4 else 8 * (4 // itemsize)
    return _round_up(max(int(rows), 1), sub) * _round_up(max(int(cols), 1), 128) * itemsize


def _choose_tm(m_rows, pack, max_tm, num_tc):
    """Row-tile choice.  On single-TC chips a problem that fits one tile stays
    one tile (the grid is a serial loop there, so splitting is pure per-step
    overhead).  On dual-TC v7x split into >=2 steps so the single 'parallel'
    grid axis shards across both TensorCores."""
    if m_rows <= max_tm:
        tm = m_rows                           # full-dim block: always legal
        if num_tc >= 2 and m_rows >= 2 * pack:
            tm = _round_up(pl.cdiv(m_rows, 2), pack)
            if tm >= m_rows:
                tm = m_rows
        return tm
    return max(pack, (max_tm // pack) * pack)


def _spiral_linear_kernel(x_ref, w_ref, b_ref, o_ref):
    # x_ref: (tm, K)  gathered spiral features (row = one node of one batch)
    # w_ref: (K, N)   pre-transposed weight (constant index_map -> resident)
    # b_ref: (1, N)   f32 bias (resident)
    # o_ref: (tm, N)  output tile at its true width (no lane padding)
    acc = jnp.dot(x_ref[...], w_ref[...], preferred_element_type=jnp.float32)
    o_ref[...] = (acc + b_ref[...]).astype(o_ref.dtype)


def prepare_spiral_params(weight, bias, compute_dtype=jnp.bfloat16):
    """One-time parameter prep (model init, NOT per forward call).

    weight: (out_channels, in_channels*seq_length)  -- PyTorch nn.Linear layout
    bias:   (out_channels,)
    Returns (w_t, b_p):
      w_t: (K, out_channels) transposed weight cast to compute_dtype
      b_p: (1, out_channels) f32 bias
    No lane padding: the kernel stores the output at its true width.  Use
    compute_dtype=jnp.float32 for a validation path closer to the torch f32
    Linear.
    """
    out_c, _ = weight.shape
    w_t = jnp.asarray(weight).T.astype(compute_dtype)
    b_p = jnp.asarray(bias).astype(jnp.float32).reshape(1, out_c)
    return w_t, b_p


def spiral_linear(xg, w_t, b_p, out_dtype):
    """y = xg @ w_t + b_p on the MXU via pallas_call (f32 accumulation)."""
    m_rows, k = xg.shape
    kw, n_out = w_t.shape
    assert k == kw, (k, kw)

    prof = _chip_profile()
    x_bytes = jnp.dtype(xg.dtype).itemsize
    w_bytes = jnp.dtype(w_t.dtype).itemsize
    o_bytes = jnp.dtype(out_dtype).itemsize

    pack = 8 * (4 // x_bytes)          # sublane pack: 8 rows f32, 16 rows bf16
    tm = _choose_tm(m_rows, pack, prof["max_tm"], prof["num_tc"])

    def vmem_need(tm_):
        # Pallas double-buffers every BlockSpec input/output; weight/bias are
        # resident (constant index_map -> DMA'd once) but still reserve 2 bufs.
        # TODO(synk): pipeline_mode=pl.Buffered(1) on weight/bias would drop
        # their second buffer; kept off for a conservative lowering path.
        return (2 * _vmem_buf_bytes(tm_, k, x_bytes)
                + 2 * _vmem_buf_bytes(k, n_out, w_bytes)
                + 2 * _vmem_buf_bytes(1, n_out, 4)
                + 2 * _vmem_buf_bytes(tm_, n_out, o_bytes))

    # Shrink the row tile if the budget would blow the per-generation cap.
    while vmem_need(tm) + (8 << 20) > prof["vmem_cap"] and tm > pack:
        tm = max(pack, _round_up(tm // 2, pack))

    grid = (pl.cdiv(m_rows, tm),)
    vmem_limit = int(min(max(vmem_need(tm) + (8 << 20), 32 << 20), prof["vmem_cap"]))

    # Honest operand traffic for XLA's scheduler.  If allow_input_fusion ends
    # up fusing the gather producer, the true activation reads are the
    # un-expanded x plus the int32 index table (seq_length x smaller); this
    # estimate stays advisory for the unfused operands the kernel declares.
    cost = pl.CostEstimate(
        flops=2 * m_rows * k * n_out,
        transcendentals=0,
        bytes_accessed=(m_rows * k * x_bytes + k * n_out * w_bytes
                        + n_out * 4 + m_rows * n_out * o_bytes),
    )

    return pl.pallas_call(
        _spiral_linear_kernel,
        out_shape=jax.ShapeDtypeStruct((m_rows, n_out), out_dtype),
        grid_spec=pltpu.PrefetchScalarGridSpec(
            num_scalar_prefetch=0,
            grid=grid,
            in_specs=[
                pl.BlockSpec((tm, k), lambda i: (i, 0)),      # gathered-x row tile
                pl.BlockSpec((k, n_out), lambda i: (0, 0)),   # full weight, resident
                pl.BlockSpec((1, n_out), lambda i: (0, 0)),   # bias, resident
            ],
            out_specs=pl.BlockSpec((tm, n_out), lambda i: (i, 0)),
        ),
        compiler_params=pltpu.CompilerParams(
            dimension_semantics=("parallel",),
            vmem_limit_bytes=vmem_limit,
            # Let XLA fuse the spiral-gather producer into operand 0 so the
            # seq_length-expanded activations need not round-trip through HBM.
            allow_input_fusion=[True, False, False],
        ),
        cost_estimate=cost,
    )(xg, w_t, b_p)


def spiral_conv_forward(x, indices, w_t, b_p, *, out_dtype=None):
    """SpiralConv.forward for the 2-D / 3-D input cases (dim=1, tsteps=1).

    x:        (bs, n_nodes, in_channels)  or  (n_nodes, in_channels)
    indices:  (n_nodes, seq_length) int32 spiral neighbourhoods
    w_t, b_p: outputs of prepare_spiral_params
    returns   (bs, n_nodes, out_channels)  (or (n_nodes, out_channels))
    """
    squeeze = x.ndim == 2
    if squeeze:
        x = x[None]            # 2-D path == batch of 1 (index_select on dim 0)
    bs, _, cin = x.shape
    n_nodes, seq_len = indices.shape
    assert w_t.shape[0] == cin * seq_len, (w_t.shape, cin, seq_len)
    out_c = w_t.shape[1]
    if out_dtype is None:
        out_dtype = x.dtype    # f32 default matches the torch Linear output.
        # (pass out_dtype=jnp.bfloat16 when the consumer is bf16 — most useful
        #  on v5e, the most store-slot / bandwidth constrained generation.)

    # Cast to the MXU compute dtype BEFORE the gather so the seq_length-times
    # expanded activations move half the HBM bytes.
    xc = x.astype(w_t.dtype)

    # torch.index_select(x, 1, indices.view(-1)).view(bs, n_nodes, -1)
    # NOTE: jnp.take clamps out-of-bounds indices (torch raises); validate the
    # spiral table once at model-build time (see __main__).
    xg = jnp.take(xc, indices.reshape(-1), axis=1)          # (bs, n_nodes*seq, cin)
    xg = xg.reshape(bs * n_nodes, seq_len * cin)            # (M, K)
    # TODO(synk): a fully in-kernel gather (scalar-prefetched indices + a
    # VMEM-resident x) is not expressible for general n_nodes; the
    # allow_input_fusion flag on the pallas_call is the stopgap that lets XLA
    # avoid materialising xg in HBM.

    y = spiral_linear(xg, w_t, b_p, out_dtype)              # (M, out_c) unpadded
    y = y.reshape(bs, n_nodes, out_c)
    return y[0] if squeeze else y


if __name__ == "__main__":
    # Small, deterministic example consistent with the module's 3-D forward path.
    bs, n_nodes, in_channels, seq_length, out_channels = 2, 16, 4, 8, 32

    key = jax.random.PRNGKey(0)
    k_x, k_idx, k_w = jax.random.split(key, 3)

    x = jax.random.normal(k_x, (bs, n_nodes, in_channels), dtype=jnp.float32)
    indices = jax.random.randint(
        k_idx, (n_nodes, seq_length), 0, n_nodes, dtype=jnp.int32)
    # torch.index_select raises on OOB spiral indices; jnp.take clamps, so
    # validate the table eagerly (correctness concern from the review).
    assert bool(jnp.all((indices >= 0) & (indices < n_nodes))), "spiral index OOB"

    # nn.Linear(in_channels*seq_length, out_channels): xavier_uniform_ weight,
    # zero bias (reset_parameters), initialized deterministically in-script.
    fan_in, fan_out = in_channels * seq_length, out_channels
    bound = math.sqrt(6.0 / (fan_in + fan_out))
    weight = jax.random.uniform(k_w, (out_channels, fan_in),
                                minval=-bound, maxval=bound, dtype=jnp.float32)
    bias = jnp.zeros((out_channels,), jnp.float32)

    # --- bf16 MXU path (production) ---
    w_t, b_p = prepare_spiral_params(weight, bias, compute_dtype=jnp.bfloat16)
    y = spiral_conv_forward(x, indices, w_t, b_p)
    jax.block_until_ready(y)
    assert y.shape == (bs, n_nodes, out_channels), y.shape

    x_bf = x.astype(jnp.bfloat16).astype(jnp.float32)
    w_bf = weight.astype(jnp.bfloat16).astype(jnp.float32)
    xg_ref = jnp.take(x_bf, indices.reshape(-1), axis=1).reshape(bs, n_nodes, -1)
    ref_bf = jnp.matmul(xg_ref, w_bf.T, precision=jax.lax.Precision.HIGHEST) + bias
    assert jnp.allclose(y, ref_bf, atol=1e-3, rtol=1e-3)

    # --- configurable f32 validation path (closer to the torch f32 Linear) ---
    w_t32, b_p32 = prepare_spiral_params(weight, bias, compute_dtype=jnp.float32)
    y32 = spiral_conv_forward(x, indices, w_t32, b_p32)
    jax.block_until_ready(y32)
    xg32 = jnp.take(x, indices.reshape(-1), axis=1).reshape(bs, n_nodes, -1)
    ref32 = jnp.matmul(xg32, weight.T, precision=jax.lax.Precision.HIGHEST) + bias
    # MXU f32 matmuls may use bf16-pass decomposition -> modest tolerance.
    assert jnp.allclose(y32, ref32, atol=1e-2, rtol=1e-2)

    print("KERNEL_OK")
</pallas_src>

<mosaic_0001>
module attributes {stable_mosaic.version = 11 : i64} {
  func.func @_spiral_linear_kernel(%arg0: i32, %arg1: memref<32x32xbf16, #tpu.memory_space<vmem>>, %arg2: memref<32x32xbf16, #tpu.memory_space<vmem>>, %arg3: memref<1x32xf32, #tpu.memory_space<vmem>>, %arg4: memref<32x32xf32, #tpu.memory_space<vmem>>) attributes {dimension_semantics = [#tpu.dimension_semantics<parallel>], iteration_bounds = array<i64: 1>, scalar_prefetch = 0 : i64, scratch_operands = 0 : i64, tpu.core_type = #tpu.core_type<tc>, window_params = [{transform_indices = @transform_0, window_bounds = array<i64: 32, 32>}, {pipeline_mode = #tpu.pipeline_mode<synchronous>, transform_indices = @transform_1, window_bounds = array<i64: 32, 32>}, {pipeline_mode = #tpu.pipeline_mode<synchronous>, transform_indices = @transform_2, window_bounds = array<i64: 1, 32>}, {transform_indices = @transform_3, window_bounds = array<i64: 32, 32>}]} {
    %c0 = arith.constant 0 : index
    %c0_0 = arith.constant 0 : index
    %0 = vector.load %arg1[%c0, %c0_0] : memref<32x32xbf16, #tpu.memory_space<vmem>>, vector<32x32xbf16>
    %c0_1 = arith.constant 0 : index
    %c0_2 = arith.constant 0 : index
    %1 = vector.load %arg2[%c0_1, %c0_2] : memref<32x32xbf16, #tpu.memory_space<vmem>>, vector<32x32xbf16>
    %cst = arith.constant dense<0.000000e+00> : vector<32x32xf32>
    %2 = tpu.matmul %0, %1, %cst {dimension_numbers = #tpu.dot_dimension_numbers<[1], [0], [0], [1], [0, 0, 1, 1], [], []>} : vector<32x32xbf16>, vector<32x32xbf16>, vector<32x32xf32> -> vector<32x32xf32>
    %c0_3 = arith.constant 0 : index
    %c0_4 = arith.constant 0 : index
    %3 = vector.load %arg3[%c0_3, %c0_4] : memref<1x32xf32, #tpu.memory_space<vmem>>, vector<1x32xf32>
    %4 = vector.broadcast %3 : vector<1x32xf32> to vector<32x32xf32>
    %5 = arith.addf %2, %4 : vector<32x32xf32>
    %c0_5 = arith.constant 0 : index
    %c0_6 = arith.constant 0 : index
    %6 = vector.load %arg4[%c0_5, %c0_6] : memref<32x32xf32, #tpu.memory_space<vmem>>, vector<32x32xf32>
    tpu.vector_store %arg4[%c0_5, %c0_6], %5 {strides = array<i32>} : memref<32x32xf32, #tpu.memory_space<vmem>>, vector<32x32xf32>,
    return
  }
  func.func @transform_0(%arg0: i32) -> (i32, i32) {
    %c0_i32 = arith.constant 0 : i32
    %c0_i32_0 = arith.constant 0 : i32
    return %arg0, %c0_i32 : i32, i32
  }
  func.func @transform_1(%arg0: i32) -> (i32, i32) {
    %c0_i32 = arith.constant 0 : i32
    %c0_i32_0 = arith.constant 0 : i32
    %c0_i32_1 = arith.constant 0 : i32
    return %c0_i32, %c0_i32_0 : i32, i32
  }
  func.func @transform_2(%arg0: i32) -> (i32, i32) {
    %c0_i32 = arith.constant 0 : i32
    %c0_i32_0 = arith.constant 0 : i32
    %c0_i32_1 = arith.constant 0 : i32
    return %c0_i32, %c0_i32_0 : i32, i32
  }
  func.func @transform_3(%arg0: i32) -> (i32, i32) {
    %c0_i32 = arith.constant 0 : i32
    %c0_i32_0 = arith.constant 0 : i32
    return %arg0, %c0_i32 : i32, i32
  }
}

</mosaic_0001>

<bundles_post_ra>
// kernel: tpu_custom_call.1
= control target key start
LH: loop header
LB: loop body
LE: loop exit
PB: predicated region body
PF: predicated region fallthrough
CT: control target
= control target key end

     0   :  { %8 = vsyncpa [#allocation3], 0  ;;  %s333_s0 = inlined_call_operand.hbm [shape: bf16[32,32], index: 0, kind: input, shape index: {}]   ;;  %s334_s1 = inlined_call_operand.hbm [shape: bf16[32,32], index: 1, kind: input, shape index: {}]   ;;  %s335_s2 = inlined_call_operand.vmem [shape: f32[1,32], index: 2, kind: input, shape index: {}]   ;;  %s336_s3 = inlined_call_operand.hbm [shape: f32[32,32], index: 3, kind: output, shape index: {}]  }
   0x1   :  { %9 = vsyncpa [#allocation6], 0 }
   0x2   :  { %10 = vsyncpa [#allocation4], 0  ;;  %s261_s12 = smov [#allocation2]   ;;  %s189_s16 = scalar_lea.hbm %s333_s0, 256 }
   0x3   :  { %s16_s13 = sshll.u32 %s261_s12, 4  ;;  %p190_p0 = scmp.ne.s32.totalorder %s333_s0, %s189_s16  ;;  %s17_s13 = int_to_ptr.vmem [resolvable:$true] %s16_s13 }
   0x4   :  { %p193_p1 = scmp.lt.u32.totalorder %s189_s16, %s333_s0 }
   0x6   :  { %p195_p2 = pnand %p193_p1, %p190_p0 }
   0x8   :  { %198 = shalt.err (!%p195_p2)
}
   0x9   :  { %s199_s21 = scalar_lea.vmem %s17_s13, 256  ;;  %p204_p4 = scmp.lt.s32.totalorder %s17_s13, %s17_s13 }
   0xa   :  { %p200_p3 = scmp.ne.s32.totalorder %s17_s13, %s199_s21  ;;  %p205_p5 = scmp.lt.s32.totalorder %s199_s21, %s199_s21 }
   0xc   :  { %p206_p6 = por %p205_p5, %p204_p4 }
   0xe   :  { %p207_p7 = pnand %p206_p6, %p200_p3 }
  0x10   :  { %210 = shalt.err (!%p207_p7)
}
  0x11   :  { %s262_s22 = smov 64   ;;  %s263_s23 = smov 4  }
  0x12   :  { %22 = dma.hbm_to_vmem [thread:$0]  %s333_s0, 256, %s17_s13, [#allocation3], %s262_s22, %s262_s22, %s263_s23  }
  0x13   :  { %s264_s26 = smov [#allocation5]   ;;  %s211_s30 = scalar_lea.hbm %s334_s1, 256 }
  0x14   :  { %s28_s27 = sshll.u32 %s264_s26, 4  ;;  %p212_p8 = scmp.ne.s32.totalorder %s334_s1, %s211_s30  ;;  %s29_s27 = int_to_ptr.vmem [resolvable:$true] %s28_s27 }
  0x15   :  { %p215_p9 = scmp.lt.u32.totalorder %s211_s30, %s334_s1 }
  0x17   :  { %p217_p10 = pnand %p215_p9, %p212_p8 }
  0x19   :  { %220 = shalt.err (!%p217_p10)
}
  0x1a   :  { %s221_s8 = scalar_lea.vmem %s29_s27, 256  ;;  %p226_p12 = scmp.lt.s32.totalorder %s29_s27, %s29_s27 }
  0x1b   :  { %p222_p11 = scmp.ne.s32.totalorder %s29_s27, %s221_s8  ;;  %p227_p13 = scmp.lt.s32.totalorder %s221_s8, %s221_s8 }
  0x1d   :  { %p228_p0 = por %p227_p13, %p226_p12 }
  0x1f   :  { %p229_p1 = pnand %p228_p0, %p222_p11 }
  0x21   :  { %232 = shalt.err (!%p229_p1)
}
  0x22   :  { %34 = dma.hbm_to_vmem [thread:$0]  %s334_s1, 256, %s29_s27, [#allocation6], %s262_s22, %s262_s22, %s263_s23  }
  0x23   :  { %255 = dma.done.wait [#allocation3], 256  }
  0x24   :  { %256 = vsyncadd [#allocation3], 4294967040 }
  0x25   :  { %257 = dma.done.wait [#allocation6], 256  }
  0x26   :  { %258 = vsyncadd [#allocation6], 4294967040  ;;  %v185_v0 = vld [vmem:[#allocation5] sm:$0xff]   ;;  %v186_v1 = vld [vmem:[#allocation5 + $0x8] sm:$0xff]   ;;  %vm81_vm0 = vcmask 261120   ;;  %s265_s1 = smov [#allocation7]  }
  0x27   :  { %170 = vmatprep.subr.bf16.mxu0 %v185_v0  ;;  %v187_v2 = vld [vmem:[#allocation2] sm:$0xff]   ;;  %v188_v3 = vld [vmem:[#allocation2 + $0x8] sm:$0xff]   ;;  %s146_s12 = sshll.u32 %s265_s1, 4  ;;  %s147_s12 = int_to_ptr.vmem [resolvable:$true] %s146_s12 }
  0x28   :  { %171 = vmatpush3.bf16.msra.mxu0 %v185_v0  ;;  %174 = vmatprep.mubr.msk.bf16.mxu0 %vm81_vm0, %v187_v2  ;;  %v159_v4 = vld [vmem:[%s335_s2] ss:$0 sm:$0xff]  ;;  %s233_s2 = scalar_lea.vmem %s147_s12, 512  ;;  %p238_p3 = scmp.lt.s32.totalorder %s147_s12, %s147_s12 }
  0x29   :  { %172 = vmatprep.subr.bf16.mxu0 %v186_v1  ;;  %p234_p2 = scmp.ne.s32.totalorder %s147_s12, %s233_s2  ;;  %p239_p4 = scmp.lt.s32.totalorder %s233_s2, %s233_s2 }
  0x2b   :  { %p240_p5 = por %p239_p4, %p238_p3 }
  0x2c   :  { %173 = vmatpush3.bf16.msra.mxu0 %v186_v1 }
  0x2d   :  { %p241_p6 = pnand %p240_p5, %p234_p2 }
  0x2f   :  { %175 = vmatmul.mubr.msk.bf16.vlgmr.msra.gmra.mrb[0].mxu0 %vm81_vm0, %v188_v3 }
 0x102   :  { %v176_v5 = vpop.f32.mrb[0].mxu0 }
 0x103   :  { %v131_v6 = vadd.f32 %v176_v5, %v159_v4  ;;  %v122_v7 = vpop.f32.mrb[1].mxu0 }
 0x104   :  { %v123_v8 = vadd.f32 %v159_v4, %v122_v7  ;;  %v177_v9 = vpop.f32.mrb[2].mxu0 }
 0x105   :  { %139 = vst.msk [vmem:[#allocation7 + $0x10] sm:$0xff] %vm81_vm0, %v131_v6  ;;  %v134_v10 = vadd.f32 %v177_v9, %v159_v4  ;;  %v125_v11 = vpop.f32.mrb[3].mxu0 }
 0x106   :  { %137 = vst.msk [vmem:[#allocation7] sm:$0xff] %vm81_vm0, %v123_v8  ;;  %v126_v12 = vadd.f32 %v159_v4, %v125_v11 }
 0x107   :  { %140 = vst.msk [vmem:[#allocation7 + $0x18] sm:$0xff] %vm81_vm0, %v134_v10 }
 0x108   :  { %138 = vst.msk [vmem:[#allocation7 + $0x8] sm:$0xff] %vm81_vm0, %v126_v12 }
 0x109   :  { %244 = shalt.err (!%p241_p6)
}
 0x10a   :  { %s245_s15 = scalar_lea.hbm %s336_s3, 512 }
 0x10b   :  { %p246_p7 = scmp.ne.s32.totalorder %s336_s3, %s245_s15  ;;  %p249_p8 = scmp.lt.u32.totalorder %s245_s15, %s336_s3 }
 0x10d   :  { %p251_p9 = pnand %p249_p8, %p246_p7 }
 0x10f   :  { %254 = shalt.err (!%p251_p9)
}
 0x110   :  { %s266_s20 = smov 128   ;;  %s267_s21 = smov 8  }
 0x111   :  { %152 = dma.vmem_to_hbm [thread:$0]  %s147_s12, 512, %s336_s3, [#allocation4], %s266_s20, %s266_s20, %s267_s21  }
 0x112   :  { %259 = dma.done.wait [#allocation4], 512  }
 0x113   :  { %260 = vsyncadd [#allocation4], 4294966784 }
 0x114   :  { %156 = vsyncpa [#allocation3], 1 }
 0x115   :  { %157 = vsyncpa [#allocation6], 1 }
 0x116   :  { %158 = vsyncpa [#allocation4], 1 }

</bundles_post_ra>
